<compile_context>
chip_gen: v7x
topology: tpu7x:2x2x1
jax: 0.10.0
libtpu: 0.0.40
codegen_flags: <defaults>
</compile_context>

<pallas_src>
import jax
import jax.numpy as jnp
from jax.experimental import pallas as pl
from jax.experimental.pallas import tpu as pltpu


# ----------------------------- kernels -------------------------------------


def _project_kernel(x_ref, w_ref, dinv_ref, y_ref):
    """Y_tile = dinv[rows] * (X_tile @ W), bf16 in / bf16 out, f32 accumulate."""
    xw = jnp.dot(x_ref[...], w_ref[...], preferred_element_type=jnp.float32)
    y_ref[...] = (dinv_ref[...] * xw).astype(y_ref.dtype)


def _make_aggregate_kernel(*, resident_y, fuse_proj, tk):
    """Builds the aggregation kernel.

    acc_tile = sum_k (A+I)_tile @ Y_k                (int8 A upcast to bf16 in VMEM)
    h        = relu( dinv[rows] * acc + b )
    out      = dinv[rows] * (h @ W_next)   (bf16)    if fuse_proj
             = h                            (f32)    otherwise
    """

    def kernel(a_ref, y_ref, dinv_ref, b_ref, *rest):
        if fuse_proj:
            w_next_ref, o_ref, acc_ref = rest
        else:
            o_ref, acc_ref = rest

        k = pl.program_id(1)

        @pl.when(k == 0)
        def _():
            acc_ref[...] = jnp.zeros_like(acc_ref)

        if resident_y:
            start = pl.multiple_of(k * tk, tk)
            y_tile = y_ref[pl.ds(start, tk), :]
        else:
            y_tile = y_ref[...]

        # 1-byte adjacency lands in VMEM; the bf16 upcast is VPU filler hidden
        # under the (HBM-bound) adjacency DMA.
        acc_ref[...] += jnp.dot(
            a_ref[...].astype(jnp.bfloat16), y_tile,
            preferred_element_type=jnp.float32,
        )

        @pl.when(k == pl.num_programs(1) - 1)
        def _():
            h = jnp.maximum(dinv_ref[...] * acc_ref[...] + b_ref[...], 0.0)
            if fuse_proj:
                # next layer's projection fused into the epilogue:
                # y_next = D^{-1/2} (relu(...) @ W_next), emitted in bf16.
                y_next = jnp.dot(
                    h.astype(jnp.bfloat16), w_next_ref[...],
                    preferred_element_type=jnp.float32,
                )
                o_ref[...] = (dinv_ref[...] * y_next).astype(o_ref.dtype)
            else:
                o_ref[...] = h.astype(o_ref.dtype)

    return kernel


# ----------------------------- wrappers ------------------------------------


def _round_up(v, m):
    return ((v + m - 1) // m) * m


def _pick_tile(n_pad, cap):
    """Largest multiple-of-128 divisor of n_pad that is <= cap."""
    t = min(cap, n_pad)
    while n_pad % t != 0:
        t -= 128
    return t


def _vmem_limit_bytes():
    """48 MiB is safe on v7x (64 MiB physical); go higher on 128 MiB parts."""
    try:
        cap = pltpu.get_tpu_info().vmem_capacity_bytes
        if cap >= 96 * 2**20:
            return 100 * 2**20
    except Exception:
        pass
    return 48 * 2**20


def _project(x_pad, w_pad, dinv_col, n_pad, c, tm, vmem_limit):
    return pl.pallas_call(
        _project_kernel,
        out_shape=jax.ShapeDtypeStruct((n_pad, c), jnp.bfloat16),
        grid=(n_pad // tm,),
        in_specs=[
            pl.BlockSpec((tm, c), lambda i: (i, 0)),   # X row tile (bf16)
            pl.BlockSpec((c, c), lambda i: (0, 0)),    # W (bf16, resident)
            pl.BlockSpec((tm, 1), lambda i: (i, 0)),   # dinv rows
        ],
        out_specs=pl.BlockSpec((tm, c), lambda i: (i, 0)),
        compiler_params=pltpu.CompilerParams(
            dimension_semantics=("parallel",),
            vmem_limit_bytes=vmem_limit,
        ),
    )(x_pad, w_pad, dinv_col)


def _aggregate(adj_i8, y, dinv_col, b_pad, w_next, n_pad, c, tm, tk,
               out_dtype, vmem_limit, resident_y):
    fuse = w_next is not None
    kernel = _make_aggregate_kernel(resident_y=resident_y, fuse_proj=fuse, tk=tk)

    if resident_y:
        # full Y stays in VMEM across the k loop; slice in-kernel.
        y_spec = pl.BlockSpec((n_pad, c), lambda i, k: (0, 0))
    else:
        y_spec = pl.BlockSpec((tk, c), lambda i, k: (k, 0))

    in_specs = [
        pl.BlockSpec((tm, tk), lambda i, k: (i, k)),   # (A+I) tile, int8
        y_spec,                                        # Y (bf16)
        pl.BlockSpec((tm, 1), lambda i, k: (i, 0)),    # dinv rows
        pl.BlockSpec((1, c), lambda i, k: (0, 0)),     # bias
    ]
    args = [adj_i8, y, dinv_col, b_pad]
    if fuse:
        in_specs.append(pl.BlockSpec((c, c), lambda i, k: (0, 0)))  # W_next
        args.append(w_next)

    return pl.pallas_call(
        kernel,
        out_shape=jax.ShapeDtypeStruct((n_pad, c), out_dtype),
        grid=(n_pad // tm, n_pad // tk),               # reduction axis last
        in_specs=in_specs,
        out_specs=pl.BlockSpec((tm, c), lambda i, k: (i, 0)),
        scratch_shapes=[pltpu.VMEM((tm, c), jnp.float32)],
        compiler_params=pltpu.CompilerParams(
            dimension_semantics=("parallel", "arbitrary"),
            vmem_limit_bytes=vmem_limit,
        ),
    )(*args)


def precompute_graph(edge_index, n, n_pad):
    """Graph-only precompute (hoist this out when the graph is static).

    Returns the int8 (A + I) adjacency (1 byte/element, built directly in its
    storage dtype) and the D^{-1/2} column (f32), both padded to n_pad.
    """
    src = edge_index[0].astype(jnp.int32)
    dst = edge_index[1].astype(jnp.int32)
    diag = jnp.arange(n, dtype=jnp.int32)
    adj = (
        jnp.zeros((n_pad, n_pad), jnp.int8)
        .at[dst, src].add(jnp.int8(1))          # messages flow src -> dst
        .at[diag, diag].add(jnp.int8(1))        # self loops (the +I) folded in
    )
    # degree of (A + I) via O(E) scatter -- no O(N^2) row-sum pass.
    deg = (
        jnp.zeros((n_pad,), jnp.float32).at[dst].add(1.0)
        + (jnp.arange(n_pad) < n).astype(jnp.float32)
    )
    dinv = jnp.where(deg > 0, jax.lax.rsqrt(jnp.maximum(deg, 1.0)), 0.0)
    return adj, dinv.reshape(n_pad, 1)


def attribute_decoder_forward(x, edge_index, w1, b1, w2, b2, *, graph=None):
    """x: (N, nhid) f32, edge_index: (2, E) int32. Returns (N, nfeat) f32."""
    n, nhid = x.shape
    nfeat = w2.shape[1]

    # lane-dense channel width; node dim padded so tiles never degrade to 128
    c = _round_up(max(nhid, nfeat), 128)
    n128 = _round_up(max(n, 8), 128)
    n_pad = n128 if n128 <= 512 else _round_up(n128, 512)

    tm = _pick_tile(n_pad, 1024)
    if n_pad // tm < 2 and tm % 256 == 0:
        tm //= 2          # keep >= 2 row tiles so v7x's two TCs both get work
    tk = _pick_tile(n_pad, 2048)

    vmem_limit = _vmem_limit_bytes()
    # keep Y VMEM-resident across the reduction loop when it comfortably fits
    # (budget 2 buffers; leave ~24 MiB headroom for A double-buffer + scratch)
    resident_y = (2 * n_pad * c * 2) <= max(vmem_limit - 24 * 2**20, 0)

    if graph is None:
        graph = precompute_graph(edge_index, n, n_pad)
    adj_i8, dinv_col = graph

    # ---- zero-pad features / params; feature path is bf16 end-to-end -------
    x_pad = jnp.zeros((n_pad, c), jnp.bfloat16).at[:n, :nhid].set(
        x.astype(jnp.bfloat16))
    w1_p = jnp.zeros((c, c), jnp.bfloat16).at[:nhid, :nhid].set(
        w1.astype(jnp.bfloat16))
    b1_p = jnp.zeros((1, c), jnp.float32).at[0, :nhid].set(b1)
    w2_p = jnp.zeros((c, c), jnp.bfloat16).at[:nhid, :nfeat].set(
        w2.astype(jnp.bfloat16))
    b2_p = jnp.zeros((1, c), jnp.float32).at[0, :nfeat].set(b2)

    # layer 1 projection: y1 = D^{-1/2} (X W1)
    y1 = _project(x_pad, w1_p, dinv_col, n_pad, c, tm, vmem_limit)

    # layer 1 aggregation + relu, fused with layer 2's projection:
    #   y2 = D^{-1/2} ( relu( D^{-1/2} (A+I) y1 + b1 ) @ W2 )     (bf16)
    # F.dropout(..., training=False) is the identity at inference.
    # TODO(synk): training-mode dropout would need pltpu.prng_seed/prng_random_bits.
    y2 = _aggregate(adj_i8, y1, dinv_col, b1_p, w2_p, n_pad, c, tm, tk,
                    jnp.bfloat16, vmem_limit, resident_y)

    # layer 2 aggregation + relu (final output stays f32)
    out = _aggregate(adj_i8, y2, dinv_col, b2_p, None, n_pad, c, tm, tk,
                     jnp.float32, vmem_limit, resident_y)

    return out[:n, :nfeat]


# ----------------------------- test harness --------------------------------


def _glorot(key, shape):
    fan_in, fan_out = shape
    limit = (6.0 / (fan_in + fan_out)) ** 0.5
    return jax.random.uniform(key, shape, jnp.float32, -limit, limit)


def _reference(x, edge_index, w1, b1, w2, b2):
    n = x.shape[0]
    adj = jnp.zeros((n, n), jnp.float32).at[edge_index[1], edge_index[0]].add(1.0)
    adj = adj + jnp.eye(n, dtype=jnp.float32)
    deg = jnp.sum(adj, axis=1)
    dinv = jnp.where(deg > 0, jax.lax.rsqrt(deg), 0.0)
    a_hat = adj * dinv[:, None] * dinv[None, :]
    h1 = jnp.maximum(a_hat @ (x @ w1) + b1, 0.0)
    return jnp.maximum(a_hat @ (h1 @ w2) + b2, 0.0)


if __name__ == "__main__":
    N, NFEAT, NHID = 8, 16, 32

    key = jax.random.PRNGKey(0)
    kx, kw1, kw2 = jax.random.split(key, 3)

    x = jax.random.normal(kx, (N, NHID), jnp.float32)

    # deterministic small graph: bidirectional ring
    src = jnp.arange(N, dtype=jnp.int32)
    dst = (src + 1) % N
    edge_index = jnp.concatenate(
        [jnp.stack([src, dst]), jnp.stack([dst, src])], axis=1
    )  # (2, 16)

    # GCNConv params: gc1 (nhid -> nhid), gc2 (nhid -> nfeat)
    w1 = _glorot(kw1, (NHID, NHID))
    b1 = jnp.full((NHID,), 0.01, jnp.float32)
    w2 = _glorot(kw2, (NHID, NFEAT))
    b2 = jnp.full((NFEAT,), 0.01, jnp.float32)

    out = attribute_decoder_forward(x, edge_index, w1, b1, w2, b2)
    out = jax.block_until_ready(out)

    ref = _reference(x, edge_index, w1, b1, w2, b2)
    assert out.shape == (N, NFEAT)
    # bf16 MXU operands / bf16 intermediate -> relaxed tolerance
    assert jnp.allclose(out, ref, atol=5e-2, rtol=5e-2), float(
        jnp.max(jnp.abs(out - ref))
    )

    print("KERNEL_OK")
</pallas_src>

<mosaic_0001>
module attributes {stable_mosaic.version = 11 : i64} {
  func.func @_project_kernel(%arg0: i32, %arg1: memref<128x128xbf16, #tpu.memory_space<vmem>>, %arg2: memref<128x128xbf16, #tpu.memory_space<vmem>>, %arg3: memref<128x1xf32, #tpu.memory_space<vmem>>, %arg4: memref<128x128xbf16, #tpu.memory_space<vmem>>) attributes {dimension_semantics = [#tpu.dimension_semantics<parallel>], iteration_bounds = array<i64: 1>, scalar_prefetch = 0 : i64, scratch_operands = 0 : i64, tpu.core_type = #tpu.core_type<tc>, window_params = [{transform_indices = @transform_0, window_bounds = array<i64: 128, 128>}, {pipeline_mode = #tpu.pipeline_mode<synchronous>, transform_indices = @transform_1, window_bounds = array<i64: 128, 128>}, {transform_indices = @transform_2, window_bounds = array<i64: 128, 1>}, {transform_indices = @transform_3, window_bounds = array<i64: 128, 128>}]} {
    %c0 = arith.constant 0 : index
    %c0_0 = arith.constant 0 : index
    %0 = vector.load %arg1[%c0, %c0_0] : memref<128x128xbf16, #tpu.memory_space<vmem>>, vector<128x128xbf16>
    %c0_1 = arith.constant 0 : index
    %c0_2 = arith.constant 0 : index
    %1 = vector.load %arg2[%c0_1, %c0_2] : memref<128x128xbf16, #tpu.memory_space<vmem>>, vector<128x128xbf16>
    %cst = arith.constant dense<0.000000e+00> : vector<128x128xf32>
    %2 = tpu.matmul %0, %1, %cst {dimension_numbers = #tpu.dot_dimension_numbers<[1], [0], [0], [1], [0, 0, 1, 1], [], []>} : vector<128x128xbf16>, vector<128x128xbf16>, vector<128x128xf32> -> vector<128x128xf32>
    %c0_3 = arith.constant 0 : index
    %c0_4 = arith.constant 0 : index
    %3 = vector.load %arg3[%c0_3, %c0_4] : memref<128x1xf32, #tpu.memory_space<vmem>>, vector<128x1xf32>
    %4 = vector.broadcast %3 : vector<128x1xf32> to vector<128x128xf32>
    %5 = arith.mulf %4, %2 : vector<128x128xf32>
    %6 = arith.truncf %5 : vector<128x128xf32> to vector<128x128xbf16>
    %c0_5 = arith.constant 0 : index
    %c0_6 = arith.constant 0 : index
    %7 = vector.load %arg4[%c0_5, %c0_6] : memref<128x128xbf16, #tpu.memory_space<vmem>>, vector<128x128xbf16>
    tpu.vector_store %arg4[%c0_5, %c0_6], %6 {strides = array<i32>} : memref<128x128xbf16, #tpu.memory_space<vmem>>, vector<128x128xbf16>,
    return
  }
  func.func @transform_0(%arg0: i32) -> (i32, i32) {
    %c0_i32 = arith.constant 0 : i32
    %c0_i32_0 = arith.constant 0 : i32
    return %arg0, %c0_i32 : i32, i32
  }
  func.func @transform_1(%arg0: i32) -> (i32, i32) {
    %c0_i32 = arith.constant 0 : i32
    %c0_i32_0 = arith.constant 0 : i32
    %c0_i32_1 = arith.constant 0 : i32
    return %c0_i32, %c0_i32_0 : i32, i32
  }
  func.func @transform_2(%arg0: i32) -> (i32, i32) {
    %c0_i32 = arith.constant 0 : i32
    %c0_i32_0 = arith.constant 0 : i32
    return %arg0, %c0_i32 : i32, i32
  }
  func.func @transform_3(%arg0: i32) -> (i32, i32) {
    %c0_i32 = arith.constant 0 : i32
    %c0_i32_0 = arith.constant 0 : i32
    return %arg0, %c0_i32 : i32, i32
  }
}

</mosaic_0001>

<bundles_post_ra>
// kernel: tpu_custom_call.1
= control target key start
LH: loop header
LB: loop body
LE: loop exit
PB: predicated region body
PF: predicated region fallthrough
CT: control target
= control target key end

     0   :  { %v654_v2 = vmov 0   ;;  %s786_s0 = inlined_call_operand.vmem [shape: bf16[128,128], index: 0, kind: input, shape index: {}]   ;;  %s787_s1 = inlined_call_operand.vmem [shape: bf16[128,128], index: 1, kind: input, shape index: {}]   ;;  %s788_s2 = inlined_call_operand.vmem [shape: f32[128,1], index: 2, kind: input, shape index: {}]   ;;  %s789_s3 = inlined_call_operand.hbm [shape: bf16[128,128], index: 3, kind: output, shape index: {}]  }
   0x1   :  { %v614_v0 = vld [vmem:[%s787_s1] sm:$0xff]   ;;  %v615_v1 = vld [vmem:[%s787_s1 + $0x8] sm:$0xff]   ;;  %613 = vset.pattern.permute.xlu1 %v654_v2  ;;  %612 = vset.pattern.permute.xlu0 %v654_v2  ;;  %v616_v3 = vld [vmem:[%s787_s1 + $0x10] sm:$0xff]  }
   0x2   :  { %560 = vmatprep.subr.bf16.mxu0 %v614_v0  ;;  %592 = vmatprep.subr.bf16.mxu1 %v614_v0  ;;  %v617_v4 = vld [vmem:[%s787_s1 + $0x18] sm:$0xff]   ;;  %v622_v5 = vld [vmem:[%s786_s0] sm:$0xff]   ;;  %v619_v8 = vld [vmem:[%s787_s1 + $0x28] sm:$0xff]  }
   0x3   :  { %561 = vmatpush3.bf16.msra.mxu0 %v614_v0  ;;  %600 = vmatpush3.bf16.msra.mxu1 %v614_v0  ;;  %v623_v6 = vld [vmem:[%s786_s0 + $0x20] sm:$0xff]   ;;  %v243_v9 = vld [vmem:[%s788_s2 + $0x10] sm:$0xff]  ;;  %v244_v11 = vld [vmem:[%s788_s2 + $0x18] sm:$0xff] }
   0x4   :  { %562 = vmatprep.subr.bf16.mxu0 %v615_v1  ;;  %593 = vmatprep.subr.bf16.mxu1 %v615_v1  ;;  %v618_v7 = vld [vmem:[%s787_s1 + $0x20] sm:$0xff]   ;;  %v242_v12 = vld [vmem:[%s788_s2 + $0x8] sm:$0xff]  ;;  %v620_v13 = vld [vmem:[%s787_s1 + $0x30] sm:$0xff]  }
   0x5   :  { %576 = vmatprep.mubr.bf16.mxu0 %v622_v5  ;;  %584 = vmatprep.mubr.bf16.mxu1 %v623_v6  ;;  %v241_v10 = vld [vmem:[%s788_s2] sm:$0xff] }
   0x6   :  { %269 = vperm.xlu1 %613, %v243_v9   ;;  %259 = vperm.xlu0 %612, %v241_v10  }
   0x7   :  { %563 = vmatpush3.bf16.msra.mxu0 %v615_v1  ;;  %601 = vmatpush3.bf16.msra.mxu1 %v615_v1 }
   0x8   :  { %564 = vmatprep.subr.bf16.mxu0 %v616_v3  ;;  %594 = vmatprep.subr.bf16.mxu1 %v616_v3 }
   0xa   :  { %274 = vperm.xlu1 %613, %v244_v11   ;;  %264 = vperm.xlu0 %612, %v242_v12  }
   0xb   :  { %565 = vmatpush3.bf16.msra.mxu0 %v616_v3  ;;  %602 = vmatpush3.bf16.msra.mxu1 %v616_v3 }
   0xc   :  { %566 = vmatprep.subr.bf16.mxu0 %v617_v4  ;;  %595 = vmatprep.subr.bf16.mxu1 %v617_v4 }
   0xf   :  { %567 = vmatpush3.bf16.msra.mxu0 %v617_v4  ;;  %603 = vmatpush3.bf16.msra.mxu1 %v617_v4 }
  0x10   :  { %568 = vmatprep.subr.bf16.mxu0 %v618_v7  ;;  %596 = vmatprep.subr.bf16.mxu1 %v618_v7 }
  0x13   :  { %569 = vmatpush3.bf16.msra.mxu0 %v618_v7  ;;  %604 = vmatpush3.bf16.msra.mxu1 %v618_v7 }
  0x14   :  { %570 = vmatprep.subr.bf16.mxu0 %v619_v8  ;;  %597 = vmatprep.subr.bf16.mxu1 %v619_v8 }
  0x15   :  { %8 = vsyncpa [#allocation3], 0  ;;  %v246_v14 = vld [vmem:[%s788_s2 + $0x28] sm:$0xff]  ;;  %v245_v15 = vld [vmem:[%s788_s2 + $0x20] sm:$0xff] }
  0x16   :  { %v621_v16 = vld [vmem:[%s787_s1 + $0x38] sm:$0xff]   ;;  %284 = vperm.xlu1 %613, %v246_v14   ;;  %279 = vperm.xlu0 %612, %v245_v15   ;;  %v247_v18 = vld [vmem:[%s788_s2 + $0x30] sm:$0xff]  ;;  %v624_v19 = vld [vmem:[%s786_s0 + $0x8] sm:$0xff]  }
  0x17   :  { %571 = vmatpush3.bf16.msra.mxu0 %v619_v8  ;;  %605 = vmatpush3.bf16.msra.mxu1 %v619_v8  ;;  %v248_v17 = vld [vmem:[%s788_s2 + $0x38] sm:$0xff]  ;;  %v625_v20 = vld [vmem:[%s786_s0 + $0x28] sm:$0xff]   ;;  %v249_v22 = vld [vmem:[%s788_s2 + $0x40] sm:$0xff] }
  0x18   :  { %572 = vmatprep.subr.bf16.mxu0 %v620_v13  ;;  %598 = vmatprep.subr.bf16.mxu1 %v620_v13  ;;  %v250_v21 = vld [vmem:[%s788_s2 + $0x48] sm:$0xff]  ;;  %v626_v23 = vld [vmem:[%s786_s0 + $0x10] sm:$0xff]   ;;  %v252_v25 = vld [vmem:[%s788_s2 + $0x58] sm:$0xff] }
  0x19   :  { %v627_v24 = vld [vmem:[%s786_s0 + $0x30] sm:$0xff]   ;;  %v628_v27 = vld [vmem:[%s786_s0 + $0x18] sm:$0xff]   ;;  %v254_v29 = vld [vmem:[%s788_s2 + $0x68] sm:$0xff] }
  0x1a   :  { %294 = vperm.xlu1 %613, %v248_v17   ;;  %289 = vperm.xlu0 %612, %v247_v18   ;;  %v251_v26 = vld [vmem:[%s788_s2 + $0x50] sm:$0xff]  ;;  %v629_v28 = vld [vmem:[%s786_s0 + $0x38] sm:$0xff]   ;;  %v253_v30 = vld [vmem:[%s788_s2 + $0x60] sm:$0xff]  ;;  %s655_s0 = smov [#allocation2]  }
  0x1b   :  { %573 = vmatpush3.bf16.msra.mxu0 %v620_v13  ;;  %606 = vmatpush3.bf16.msra.mxu1 %v620_v13  ;;  %v256_v31 = vld [vmem:[%s788_s2 + $0x78] sm:$0xff]  ;;  %v255_v32 = vld [vmem:[%s788_s2 + $0x70] sm:$0xff]  ;;  %s438_s2 = sshll.u32 %s655_s0, 4  ;;  %s439_s2 = int_to_ptr.vmem [resolvable:$true] %s438_s2 }
  0x1c   :  { %574 = vmatprep.subr.bf16.mxu0 %v621_v16  ;;  %599 = vmatprep.subr.bf16.mxu1 %v621_v16  ;;  %s630_s21 = scalar_lea.vmem %s439_s2, 1024  ;;  %p635_p1 = scmp.lt.s32.totalorder %s439_s2, %s439_s2 }
  0x1d   :  { %p631_p0 = scmp.ne.s32.totalorder %s439_s2, %s630_s21  ;;  %p636_p2 = scmp.lt.s32.totalorder %s630_s21, %s630_s21 }
  0x1e   :  { %304 = vperm.xlu1 %613, %v250_v21   ;;  %299 = vperm.xlu0 %612, %v249_v22  }
  0x1f   :  { %575 = vmatpush3.bf16.msra.mxu0 %v621_v16  ;;  %607 = vmatpush3.bf16.msra.mxu1 %v621_v16  ;;  %p637_p3 = por %p636_p2, %p635_p1 }
  0x21   :  { %p638_p4 = pnand %p637_p3, %p631_p0 }
  0x22   :  { %577 = vmatmul.mubr.bf16.vlgmr.msra.gmra.mrb[0].mxu0 %v624_v19  ;;  %585 = vmatmul.mubr.bf16.vlgmr.msra.gmra.mrb[0].mxu1 %v625_v20 }
  0x23   :  { %580 = vmatprep.mubr.bf16.mxu0 %v626_v23  ;;  %588 = vmatprep.mubr.bf16.mxu1 %v627_v24 }
  0x24   :  { %314 = vperm.xlu1 %613, %v252_v25   ;;  %309 = vperm.xlu0 %612, %v251_v26  }
  0x28   :  { %324 = vperm.xlu1 %613, %v254_v29   ;;  %319 = vperm.xlu0 %612, %v253_v30  }
  0x2a   :  { %581 = vmatmul.mubr.bf16.gmra.mrb[4].mxu0 %v628_v27  ;;  %589 = vmatmul.mubr.bf16.gmra.mrb[4].mxu1 %v629_v28 }
  0x2c   :  { %334 = vperm.xlu1 %613, %v256_v31   ;;  %329 = vperm.xlu0 %612, %v255_v32  }
  0x85   :  { %v270_v33 = vpop.permute.xlu1 %269  ;;  %v260_v34 = vpop.permute.xlu0 %259 }
  0x89   :  { %v275_v35 = vpop.permute.xlu1 %274  ;;  %v265_v36 = vpop.permute.xlu0 %264 }
  0x95   :  { %v285_v37 = vpop.permute.xlu1 %284  ;;  %v280_v38 = vpop.permute.xlu0 %279 }
  0x99   :  { %v295_v39 = vpop.permute.xlu1 %294  ;;  %v290_v40 = vpop.permute.xlu0 %289 }
  0x9d   :  { %v305_v41 = vpop.permute.xlu1 %304  ;;  %v300_v42 = vpop.permute.xlu0 %299 }
  0xa3   :  { %v315_v43 = vpop.permute.xlu1 %314  ;;  %v310_v44 = vpop.permute.xlu0 %309 }
  0xa7   :  { %v325_v45 = vpop.permute.xlu1 %324  ;;  %v320_v46 = vpop.permute.xlu0 %319 }
  0xab   :  { %v335_v3 = vpop.permute.xlu1 %334  ;;  %v330_v4 = vpop.permute.xlu0 %329 }
  0xf5   :  { %v578_v47 = vpop.f32.mrb[0].mxu0  ;;  %v586_v48 = vpop.f32.mrb[0].mxu1 }
  0xf6   :  { %v178_v49 = vpop.f32.mrb[1].mxu0  ;;  %v210_v50 = vpop.f32.mrb[1].mxu1  ;;  %v339_v53 = vmul.f32 %v578_v47, %v270_v33  ;;  %v347_v54 = vmul.f32 %v586_v48, %v310_v44 }
  0xf7   :  { %v579_v51 = vpop.f32.mrb[2].mxu0  ;;  %v587_v52 = vpop.f32.mrb[2].mxu1  ;;  %v337_v59 = vmul.f32 %v260_v34, %v178_v49  ;;  %v345_v60 = vmul.f32 %v300_v42, %v210_v50 }
  0xf8   :  { %v340_v55 = vmul.f32 %v579_v51, %v275_v35  ;;  %v348_v56 = vmul.f32 %v587_v52, %v315_v43  ;;  %v181_v57 = vpop.f32.mrb[3].mxu0  ;;  %v213_v58 = vpop.f32.mrb[3].mxu1 }
  0xf9   :  { %v338_v61 = vmul.f32 %v265_v36, %v181_v57  ;;  %v346_v62 = vmul.f32 %v305_v41, %v213_v58 }
  0xfa   :  { %v505_v63 = vpack.c.bf16 %v340_v55, %v339_v53  ;;  %v525_v0 = vpack.c.bf16 %v348_v56, %v347_v54 }
  0xfb   :  { %v500_v1 = vpack.c.bf16 %v338_v61, %v337_v59  ;;  %v520_v2 = vpack.c.bf16 %v346_v62, %v345_v60 }
  0xfc   :  { %537 = vst [vmem:[#allocation2 + $0x8] sm:$0xff] %v505_v63   ;;  %541 = vst [vmem:[#allocation2 + $0x28] sm:$0xff] %v525_v0  }
  0xfd   :  { %501 = vst [vmem:[#allocation2] sm:$0xff] %v500_v1   ;;  %540 = vst [vmem:[#allocation2 + $0x20] sm:$0xff] %v520_v2   ;;  %v582_v5 = vpop.f32.mrb[4].mxu0  ;;  %v590_v6 = vpop.f32.mrb[4].mxu1 }
  0xfe   :  { %v194_v7 = vpop.f32.mrb[5].mxu0  ;;  %v226_v8 = vpop.f32.mrb[5].mxu1  ;;  %v343_v11 = vmul.f32 %v582_v5, %v290_v40  ;;  %v351_v12 = vmul.f32 %v590_v6, %v330_v4 }
  0xff   :  { %v583_v9 = vpop.f32.mrb[6].mxu0  ;;  %v591_v10 = vpop.f32.mrb[6].mxu1  ;;  %v341_v17 = vmul.f32 %v280_v38, %v194_v7  ;;  %v349_v18 = vmul.f32 %v320_v46, %v226_v8 }
 0x100   :  { %v344_v13 = vmul.f32 %v583_v9, %v295_v39  ;;  %v352_v14 = vmul.f32 %v591_v10, %v335_v3  ;;  %v197_v15 = vpop.f32.mrb[7].mxu0  ;;  %v229_v16 = vpop.f32.mrb[7].mxu1 }
 0x101   :  { %v342_v19 = vmul.f32 %v285_v37, %v197_v15  ;;  %v350_v20 = vmul.f32 %v325_v45, %v229_v16 }
 0x102   :  { %v515_v21 = vpack.c.bf16 %v344_v13, %v343_v11  ;;  %v535_v22 = vpack.c.bf16 %v352_v14, %v351_v12 }
 0x103   :  { %v510_v23 = vpack.c.bf16 %v342_v19, %v341_v17  ;;  %v530_v24 = vpack.c.bf16 %v350_v20, %v349_v18 }
 0x104   :  { %539 = vst [vmem:[#allocation2 + $0x18] sm:$0xff] %v515_v21   ;;  %543 = vst [vmem:[#allocation2 + $0x38] sm:$0xff] %v535_v22  }
 0x105   :  { %538 = vst [vmem:[#allocation2 + $0x10] sm:$0xff] %v510_v23   ;;  %542 = vst [vmem:[#allocation2 + $0x30] sm:$0xff] %v530_v24  }
 0x106   :  { %641 = shalt.err (!%p638_p4)
}
 0x107   :  { %s642_s23 = scalar_lea.hbm %s789_s3, 1024 }
 0x108   :  { %p643_p5 = scmp.ne.s32.totalorder %s789_s3, %s642_s23  ;;  %p646_p6 = scmp.lt.u32.totalorder %s642_s23, %s789_s3 }
 0x10a   :  { %p648_p7 = pnand %p646_p6, %p643_p5 }
 0x10c   :  { %651 = shalt.err (!%p648_p7)
}
 0x10d   :  { %s656_s28 = smov 64   ;;  %s657_s29 = smov 4  }
 0x10e   :  { %444 = dma.vmem_to_hbm [thread:$0]  %s439_s2, 1024, %s789_s3, [#allocation3], %s656_s28, %s656_s28, %s657_s29  }
 0x10f   :  { %652 = dma.done.wait [#allocation3], 1024  }
 0x110   :  { %653 = vsyncadd [#allocation3], 4294966272 }
 0x111   :  { %448 = vsyncpa [#allocation3], 1 }

</bundles_post_ra>
